<compile_context>
chip_gen: v7x
topology: tpu7x:2x2x1
jax: 0.10.0
libtpu: 0.0.40
codegen_flags: <defaults>
</compile_context>

<pallas_src>
import functools
import math

import jax
import jax.numpy as jnp
from jax import lax
from jax.experimental import pallas as pl
from jax.experimental.pallas import tpu as pltpu


def _round_up(v, m):
    return ((v + m - 1) // m) * m


# ---------------------------------------------------------------------------
# Kernels
# ---------------------------------------------------------------------------
def _fourier_filter_fused_kernel(p_ref, x_ref, var_ref, inv_ref):
    """x_inv = P @ x with P = U@V (exact masked-bin projector); x_var = x - x_inv."""
    x = x_ref[...]                                   # no full-tile up-cast
    x_inv = jnp.dot(p_ref[...], x,
                    preferred_element_type=jnp.float32,
                    precision=lax.Precision.HIGHEST)
    inv_ref[...] = x_inv.astype(inv_ref.dtype)
    var_ref[...] = (x - x_inv).astype(var_ref.dtype)  # promotes only if needed


def _fourier_filter_lowrank_kernel(u_ref, v_ref, x_ref, var_ref, inv_ref):
    """Rank<=2m path for long sequences (t_pad > 512): x_inv = U @ (V @ x)."""
    x = x_ref[...]
    coeff = jnp.dot(v_ref[...], x,
                    preferred_element_type=jnp.float32,
                    precision=lax.Precision.HIGHEST)       # (r_pad, tn)
    x_inv = jnp.dot(u_ref[...], coeff,
                    preferred_element_type=jnp.float32,
                    precision=lax.Precision.HIGHEST)       # (t_pad, tn)
    inv_ref[...] = x_inv.astype(inv_ref.dtype)
    var_ref[...] = (x - x_inv).astype(var_ref.dtype)


# ---------------------------------------------------------------------------
# Setup helpers (trace-time, tiny)
# ---------------------------------------------------------------------------
def _build_lowrank_factors(seq_len, mask_bins, t_pad, r_pad):
    """f32 U (t_pad,r_pad), V (r_pad,t_pad) with U@V@x == irfft(masked-only rfft(x))."""
    m = len(mask_bins)
    if m == 0:
        return (jnp.zeros((t_pad, r_pad), jnp.float32),
                jnp.zeros((r_pad, t_pad), jnp.float32))
    t = jnp.arange(seq_len, dtype=jnp.float32)
    ks = jnp.asarray(mask_bins, dtype=jnp.float32)                    # (m,)
    ang = (2.0 * math.pi / seq_len) * ks[:, None] * t[None, :]        # (m, T)
    cos = jnp.cos(ang)
    sin = jnp.sin(ang)
    # Analysis: Re(X_k) = sum_t x_t cos, Im(X_k) = -sum_t x_t sin.
    v = jnp.concatenate([cos, -sin], axis=0)                          # (2m, T)
    # Synthesis (irfft with only bin k nonzero): scale 2/T interior,
    # 1/T for DC / Nyquist bins.
    is_edge = ks == 0.0
    if seq_len % 2 == 0:
        is_edge = is_edge | (ks == float(seq_len // 2))
    scale = jnp.where(is_edge, 1.0 / seq_len, 2.0 / seq_len)          # (m,)
    u = jnp.concatenate([(scale[:, None] * cos).T,
                         (-scale[:, None] * sin).T], axis=1)          # (T, 2m)
    u = jnp.pad(u, ((0, t_pad - seq_len), (0, r_pad - 2 * m)))
    v = jnp.pad(v, ((0, r_pad - 2 * m), (0, t_pad - seq_len)))
    return u.astype(jnp.float32), v.astype(jnp.float32)


def _choose_col_tile(t_pad, n, itemsize, factor_bytes):
    """Lane-dense column tile: >=~2 MiB streamed slab, v7x-safe VMEM footprint,
    >=2 balanced grid steps when there is enough work (megacore)."""
    n128 = _round_up(max(n, 1), 128)
    target = 2 * 1024 * 1024
    tn = _round_up(max(target // max(itemsize * t_pad, 1), 512), 128)

    # Footprint: (x + 2 outputs) double-buffered + resident operator buffers.
    budget = 36 * 1024 * 1024            # headroom vs. v7x 64 MiB/TC VMEM

    def footprint(tile):
        return 2 * 3 * t_pad * tile * itemsize + 2 * factor_bytes

    while tn > 128 and footprint(tn) > budget:
        tn -= 128
    tn = max(128, min(tn, n128))
    # v7x megacore: give both TensorCores work when there are >= 2 lane tiles.
    if n128 >= 256:
        tn = min(tn, max(128, (n128 // 2) // 128 * 128))
    return tn, footprint(tn)


# ---------------------------------------------------------------------------
# Public wrapper
# ---------------------------------------------------------------------------
@functools.partial(jax.jit, static_argnames=("mask_spectrum",))
def fourier_filter(x, mask_spectrum):
    """x: (B, T, C) -> (x_var, x_inv), both (B, T, C)."""
    b, t, c = x.shape
    n = b * c
    dtype = x.dtype
    itemsize = jnp.dtype(dtype).itemsize

    # De-duplicate / bounds-check masked bins (duplicates would be subtracted
    # twice by the projector; torch's xf[:, mask, :] = 0 is idempotent).
    freq_bins = t // 2 + 1
    bins = []
    for k in mask_spectrum:
        k = int(k)
        if k < 0:
            k += freq_bins
        if 0 <= k < freq_bins:
            bins.append(k)
    bins = tuple(sorted(set(bins)))

    # TPU-friendly padding: dense sublane packing, lane axis (B*C) to 128.
    sub = 16 if dtype == jnp.bfloat16 else 8
    t_pad = _round_up(t, sub)
    r_pad = _round_up(max(2 * len(bins), 1), 8)

    u, v = _build_lowrank_factors(t, bins, t_pad, r_pad)

    # Short/typical sequences: fold the two dots into one resident projector
    # P = U @ V (<= ~1 MiB for t_pad <= 512).  Long sequences keep the
    # rank<=2m factors so the operator stays tiny in VMEM.
    use_fused = t_pad <= 512
    if use_fused:
        factors = (jnp.dot(u, v, precision=lax.Precision.HIGHEST),)
        factor_bytes = t_pad * t_pad * 4
    else:
        factors = (u, v)
        factor_bytes = 2 * t_pad * r_pad * 4

    tn, footprint = _choose_col_tile(t_pad, n, itemsize, factor_bytes)
    n_pad = _round_up(n, tn)

    # Lane-dense (T, B*C) layout; allow_input_fusion lets XLA fold this
    # transpose/pad into the kernel's input DMA instead of a full HBM copy.
    x2d = jnp.transpose(x, (1, 0, 2)).reshape(t, n)
    x2d = jnp.pad(x2d, ((0, t_pad - t), (0, n_pad - n)))

    out_shape = (
        jax.ShapeDtypeStruct((t_pad, n_pad), dtype),
        jax.ShapeDtypeStruct((t_pad, n_pad), dtype),
    )

    # NOTE: if profiling shows exposed input-DMA latency at small tiles, add
    # pipeline_mode=pl.Buffered(3) on this spec (low priority per review).
    x_spec = pl.BlockSpec((t_pad, tn), lambda j: (0, j))

    if use_fused:
        in_specs = [pl.BlockSpec((t_pad, t_pad), lambda j: (0, 0)), x_spec]
        kernel = _fourier_filter_fused_kernel
        flops = 2 * t_pad * t_pad * n_pad + t_pad * n_pad
    else:
        in_specs = [pl.BlockSpec((t_pad, r_pad), lambda j: (0, 0)),
                    pl.BlockSpec((r_pad, t_pad), lambda j: (0, 0)),
                    x_spec]
        kernel = _fourier_filter_lowrank_kernel
        flops = 4 * r_pad * t_pad * n_pad + t_pad * n_pad

    bytes_accessed = itemsize * 3 * t_pad * n_pad + factor_bytes

    grid_spec = pltpu.PrefetchScalarGridSpec(
        num_scalar_prefetch=0,
        grid=(n_pad // tn,),
        in_specs=in_specs,
        out_specs=[pl.BlockSpec((t_pad, tn), lambda j: (0, j)),
                   pl.BlockSpec((t_pad, tn), lambda j: (0, j))],
    )

    vmem_limit = int(min(40 * 1024 * 1024, max(footprint + (4 << 20), 16 << 20)))

    var2d, inv2d = pl.pallas_call(
        kernel,
        out_shape=out_shape,
        grid_spec=grid_spec,
        compiler_params=pltpu.CompilerParams(
            dimension_semantics=("parallel",),
            vmem_limit_bytes=vmem_limit,
            allow_input_fusion=[False] * (len(in_specs) - 1) + [True],
        ),
        cost_estimate=pl.CostEstimate(
            flops=int(flops), transcendentals=0,
            bytes_accessed=int(bytes_accessed)),
    )(*factors, x2d)

    def _unfold(y2d):
        # Consumer-side layout change; XLA fuses this with downstream ops.
        return jnp.transpose(y2d[:t, :n].reshape(t, b, c), (1, 0, 2))

    return _unfold(var2d), _unfold(inv2d)


if __name__ == "__main__":
    key = jax.random.PRNGKey(0)
    B, T, C = 2, 16, 8
    mask_spectrum = (2, 5)            # frequency bins to zero (< T//2 + 1 = 9)

    x = jax.random.normal(key, (B, T, C), dtype=jnp.float32)

    x_var, x_inv = fourier_filter(x, mask_spectrum)
    jax.block_until_ready((x_var, x_inv))

    # Reference check against plain-JAX FFT (matches torch.fft semantics).
    keep = jnp.ones((T // 2 + 1,), dtype=jnp.complex64)
    keep = keep.at[jnp.asarray(mask_spectrum)].set(0.0)
    xf = jnp.fft.rfft(x, axis=1)
    x_var_ref = jnp.fft.irfft(xf * keep[None, :, None], n=T, axis=1)
    x_inv_ref = x - x_var_ref

    assert x_var.shape == (B, T, C) and x_inv.shape == (B, T, C)
    assert jnp.allclose(x_var, x_var_ref, atol=1e-4, rtol=1e-4)
    assert jnp.allclose(x_inv, x_inv_ref, atol=1e-4, rtol=1e-4)

    print("KERNEL_OK")
</pallas_src>

<mosaic_0001>
module attributes {stable_mosaic.version = 11 : i64} {
  func.func @_fourier_filter_fused_kernel(%arg0: i32, %arg1: memref<16x16xf32, #tpu.memory_space<vmem>>, %arg2: memref<16x128xf32, #tpu.memory_space<vmem>>, %arg3: memref<16x128xf32, #tpu.memory_space<vmem>>, %arg4: memref<16x128xf32, #tpu.memory_space<vmem>>) attributes {dimension_semantics = [#tpu.dimension_semantics<parallel>], iteration_bounds = array<i64: 1>, scalar_prefetch = 0 : i64, scratch_operands = 0 : i64, tpu.core_type = #tpu.core_type<tc>, window_params = [{pipeline_mode = #tpu.pipeline_mode<synchronous>, transform_indices = @transform_0, window_bounds = array<i64: 16, 16>}, {transform_indices = @transform_1, window_bounds = array<i64: 16, 128>}, {transform_indices = @transform_2, window_bounds = array<i64: 16, 128>}, {transform_indices = @transform_3, window_bounds = array<i64: 16, 128>}]} {
    %c0 = arith.constant 0 : index
    %c0_0 = arith.constant 0 : index
    %0 = vector.load %arg2[%c0, %c0_0] : memref<16x128xf32, #tpu.memory_space<vmem>>, vector<16x128xf32>
    %c0_1 = arith.constant 0 : index
    %c0_2 = arith.constant 0 : index
    %1 = vector.load %arg1[%c0_1, %c0_2] : memref<16x16xf32, #tpu.memory_space<vmem>>, vector<16x16xf32>
    %cst = arith.constant dense<0.000000e+00> : vector<16x128xf32>
    %2 = tpu.matmul %1, %0, %cst {dimension_numbers = #tpu.dot_dimension_numbers<[1], [0], [0], [1], [0, 0, 1, 1], [], []>, precision = #tpu.contract_precision<fp32>} : vector<16x16xf32>, vector<16x128xf32>, vector<16x128xf32> -> vector<16x128xf32>
    %c0_3 = arith.constant 0 : index
    %c0_4 = arith.constant 0 : index
    %3 = vector.load %arg4[%c0_3, %c0_4] : memref<16x128xf32, #tpu.memory_space<vmem>>, vector<16x128xf32>
    tpu.vector_store %arg4[%c0_3, %c0_4], %2 {strides = array<i32>} : memref<16x128xf32, #tpu.memory_space<vmem>>, vector<16x128xf32>,
    %4 = arith.subf %0, %2 : vector<16x128xf32>
    %c0_5 = arith.constant 0 : index
    %c0_6 = arith.constant 0 : index
    %5 = vector.load %arg3[%c0_5, %c0_6] : memref<16x128xf32, #tpu.memory_space<vmem>>, vector<16x128xf32>
    tpu.vector_store %arg3[%c0_5, %c0_6], %4 {strides = array<i32>} : memref<16x128xf32, #tpu.memory_space<vmem>>, vector<16x128xf32>,
    return
  }
  func.func @transform_0(%arg0: i32) -> (i32, i32) {
    %c0_i32 = arith.constant 0 : i32
    %c0_i32_0 = arith.constant 0 : i32
    %c0_i32_1 = arith.constant 0 : i32
    return %c0_i32, %c0_i32_0 : i32, i32
  }
  func.func @transform_1(%arg0: i32) -> (i32, i32) {
    %c0_i32 = arith.constant 0 : i32
    %c0_i32_0 = arith.constant 0 : i32
    return %c0_i32, %arg0 : i32, i32
  }
  func.func @transform_2(%arg0: i32) -> (i32, i32) {
    %c0_i32 = arith.constant 0 : i32
    %c0_i32_0 = arith.constant 0 : i32
    return %c0_i32, %arg0 : i32, i32
  }
  func.func @transform_3(%arg0: i32) -> (i32, i32) {
    %c0_i32 = arith.constant 0 : i32
    %c0_i32_0 = arith.constant 0 : i32
    return %c0_i32, %arg0 : i32, i32
  }
}

</mosaic_0001>

<bundles_post_ra>
// kernel: fourier_filter.2
= control target key start
LH: loop header
LB: loop body
LE: loop exit
PB: predicated region body
PF: predicated region fallthrough
CT: control target
= control target key end

     0   :  { %v16_v1 = vlaneseq  ;;  %vm37_vm0 = vcmask 130048   ;;  %s713_s0 = inlined_call_operand.vmem [shape: f32[16,16], index: 0, kind: input, shape index: {}]   ;;  %s714_s1 = inlined_call_operand.vmem [shape: f32[16,16], index: 1, kind: input, shape index: {}]   ;;  %s715_s2 = inlined_call_operand.<no memory space> [shape: f32[], index: 2, kind: input, shape index: {}]   ;;  %s716_s3 = inlined_call_operand.vmem [shape: f32[16,128], index: 3, kind: output, shape index: {0}]   ;;  %s717_s4 = inlined_call_operand.vmem [shape: f32[16,128], index: 4, kind: output, shape index: {1}]  }
   0x1   :  { %v10_v0 = vstv %s715_s2  ;;  %v35_v2 = vld [vmem:[%s713_s0] sm:$0xff]  ;;  %v36_v3 = vld [vmem:[%s713_s0 + $0x8] sm:$0xff] }
   0x2   :  { %v39_v4 = vsel %vm37_vm0, %v35_v2, 0  ;;  %v15_v5 = vld [vmem:[%s714_s1] sm:$0xff]  ;;  %v17_v6 = vand.u32 127, %v16_v1  ;;  %v560_v7 = vld [vmem:[%s714_s1 + $0x8] sm:$0xff]  ;;  %v42_v8 = vsel %vm37_vm0, %v36_v3, 0 }
   0x3   :  { %v111_v9 = vand.u32 4294901760, %v39_v4  ;;  %v121_v10 = vand.u32 4294901760, %v42_v8 }
   0x4   :  { %vm19_vm1 = vcmp.lt.s32.totalorder %v17_v6, 16 }
   0x5   :  { %v112_v11 = vsub.f32 %v39_v4, %v111_v9  ;;  %v20_v12 = vsel %vm19_vm1, %v15_v5, %v10_v0  ;;  %v29_v13 = vsel %vm19_vm1, %v560_v7, %v10_v0  ;;  %v122_v14 = vsub.f32 %v42_v8, %v121_v10 }
   0x6   :  { %v45_v15 = vand.u32 4294901760, %v20_v12  ;;  %v48_v16 = vand.u32 4294901760, %v29_v13 }
   0x7   :  { %v113_v17 = vand.u32 4294901760, %v112_v11  ;;  %v123_v18 = vand.u32 4294901760, %v122_v14 }
   0x8   :  { %v627_v19 = vpack.c.bf16 %v48_v16, %v45_v15  ;;  %v133_v21 = vsub.f32 %v20_v12, %v45_v15  ;;  %v140_v22 = vsub.f32 %v29_v13, %v48_v16 }
   0x9   :  { %v114_v20 = vsub.f32 %v112_v11, %v113_v17  ;;  %610 = vmatprep.mubr.f32.mxu0 %v113_v17  ;;  %v124_v23 = vsub.f32 %v122_v14, %v123_v18 }
   0xa   :  { %628 = vmatprep.subr.bf16.mxu1 %v627_v19  ;;  %640 = vmatprep.subr.bf16.mxu0 %v627_v19  ;;  %v134_v25 = vand.u32 4294901760, %v133_v21  ;;  %v141_v26 = vand.u32 4294901760, %v140_v22  ;;  %v635_v34 = vpack.c.bf16 %v140_v22, %v133_v21 }
   0xb   :  { %v115_v24 = vand.u32 4294901760, %v114_v20  ;;  %630 = vmatpush3.bf16.msra.mxu1 %v627_v19  ;;  %642 = vmatpush3.bf16.msra.mxu0 %v627_v19  ;;  %v125_v27 = vand.u32 4294901760, %v124_v23 }
   0xc   :  { %v135_v28 = vsub.f32 %v133_v21, %v134_v25  ;;  %v142_v29 = vsub.f32 %v140_v22, %v141_v26  ;;  %v643_v30 = vpack.c.bf16 %v141_v26, %v134_v25 }
   0xd   :  { %589 = vmatprep.mubr.f32.mxu1 %v115_v24 }
   0xe   :  { %590 = vmatmul.mubr.f32.vlgmr.msra.gmra.mrb[0].mxu1 %v125_v27  ;;  %611 = vmatmul.mubr.f32.vlgmr.msra.gmra.mrb[0].mxu0 %v123_v18  ;;  %v136_v31 = vand.u32 4294901760, %v135_v28  ;;  %v143_v32 = vand.u32 4294901760, %v142_v29 }
   0xf   :  { %644 = vmatprep.subr.bf16.mxu0 %v643_v30  ;;  %596 = vmatprep.mubr.f32.mxu1 %v111_v9 }
  0x10   :  { %v631_v33 = vpack.c.bf16 %v143_v32, %v136_v31  ;;  %646 = vmatpush3.bf16.msra.mxu0 %v643_v30  ;;  %617 = vmatprep.mubr.f32.mxu0 %v111_v9 }
  0x11   :  { %648 = vmatprep.subr.bf16.mxu0 %v627_v19 }
  0x12   :  { %632 = vmatprep.subr.bf16.mxu1 %v631_v33 }
  0x13   :  { %634 = vmatpush3.bf16.msra.mxu1 %v631_v33 }
  0x14   :  { %636 = vmatprep.subr.bf16.mxu1 %v635_v34 }
  0x16   :  { %597 = vmatmul.mubr.f32.vlgmr.msra.gmra.mrb[0].mxu1 %v121_v10  ;;  %618 = vmatmul.mubr.f32.vlgmr.msra.gmra.mrb[0].mxu0 %v121_v10 }
  0x17   :  { %638 = vmatpush3.bf16.msra.mxu1 %v635_v34  ;;  %650 = vmatpush3.bf16.msra.mxu0 %v627_v19 }
  0x18   :  { %603 = vmatprep.mubr.f32.mxu1 %v112_v11  ;;  %624 = vmatprep.mubr.f32.mxu0 %v111_v9 }
  0x1e   :  { %604 = vmatmul.mubr.f32.vlgmr.msra.gmra.mrb[0].mxu1 %v122_v14  ;;  %625 = vmatmul.mubr.f32.vlgmr.msra.gmra.mrb[0].mxu0 %v121_v10 }
  0xf1   :  { %v605_v35 = vpop.f32.mrb[0].mxu1  ;;  %v626_v36 = vpop.f32.mrb[0].mxu0 }
  0xf2   :  { %v651_v37 = vadd.f32 %v626_v36, %v605_v35  ;;  %v290_v38 = vpop.f32.mrb[1].mxu1  ;;  %v536_v39 = vpop.f32.mrb[1].mxu0 }
  0xf3   :  { %v652_v40 = vadd.f32 %v536_v39, %v290_v38 }
  0xf4   :  { %547 = vst [vmem:[%s717_s4 + $0x8] sm:$0xff] %v651_v37  ;;  %v549_v41 = vsub.f32 %v29_v13, %v651_v37 }
  0xf5   :  { %546 = vst [vmem:[%s717_s4] sm:$0xff] %v652_v40  ;;  %v548_v42 = vsub.f32 %v20_v12, %v652_v40 }
  0xf6   :  { %551 = vst [vmem:[%s716_s3 + $0x8] sm:$0xff] %v549_v41 }
  0xf7   :  { %550 = vst [vmem:[%s716_s3] sm:$0xff] %v548_v42 }

</bundles_post_ra>
